<compile_context>
chip_gen: v5e
topology: v5e:2x2
jax: 0.10.0
libtpu: 0.0.40
codegen_flags: <defaults>
</compile_context>

<pallas_src>
import functools

import jax
import jax.numpy as jnp
from jax import lax
from jax.experimental import pallas as pl
from jax.experimental.pallas import tpu as pltpu


def _round_up(x, mult):
    return ((x + mult - 1) // mult) * mult


def _msrr_kernel(x_ref, t_ref, o_ref, acc_ref, *, inv_scale):
    # x_ref: (tn, tm), t_ref: (tn, tk), o_ref/acc_ref: (tm, tk)
    n_step = pl.program_id(2)

    @pl.when(n_step == 0)
    def _():
        acc_ref[...] = jnp.zeros_like(acc_ref)

    # inputs.T @ targets  ==  contract over axis 0 of both operands (MXU);
    # raw partial products only — no per-step elementwise epilogue.
    acc_ref[...] += lax.dot_general(
        x_ref[...], t_ref[...],
        dimension_numbers=(((0,), (0,)), ((), ())),
        preferred_element_type=jnp.float32,
    )

    @pl.when(n_step == pl.num_programs(2) - 1)
    def _():
        a = acc_ref[...]
        o_ref[...] = (((1.0 - a) ** 2) * inv_scale).astype(o_ref.dtype)


def msrr(inputs, targets, months=1, *, tm=256, tk=256, tn=512):
    """Pallas implementation of MSRR.forward(inputs, targets)."""
    n, m = inputs.shape
    n2, k = targets.shape
    assert n == n2, "inputs and targets must share the leading (sample) axis"

    # Scale uses the ORIGINAL (unpadded) N, matching targets.shape[0].
    inv_scale = 1.0 / float(months * n)

    # Clamp tiles to the (padded) problem size, keeping MXU/vreg alignment:
    # tm/tk multiples of 128 (lanes / MXU), tn multiple of 8 (f32 sublanes).
    tm = min(tm, _round_up(m, 128))
    tk = min(tk, _round_up(k, 128))
    tn = min(tn, _round_up(n, 8))

    m_pad = _round_up(m, tm)
    k_pad = _round_up(k, tk)
    n_pad = _round_up(n, tn)

    x = inputs.astype(jnp.float32)
    t = targets.astype(jnp.float32)
    # Zero-padding is safe: padded N rows add 0 to the dot product; padded
    # M/K columns are sliced off after the call.
    if (n_pad != n) or (m_pad != m):
        x = jnp.pad(x, ((0, n_pad - n), (0, m_pad - m)))
    if (n_pad != n) or (k_pad != k):
        t = jnp.pad(t, ((0, n_pad - n), (0, k_pad - k)))

    grid = (m_pad // tm, k_pad // tk, n_pad // tn)
    kernel = functools.partial(_msrr_kernel, inv_scale=inv_scale)

    out = pl.pallas_call(
        kernel,
        out_shape=jax.ShapeDtypeStruct((m_pad, k_pad), jnp.float32),
        grid=grid,
        in_specs=[
            pl.BlockSpec((tn, tm), lambda i, j, nn: (nn, i)),
            pl.BlockSpec((tn, tk), lambda i, j, nn: (nn, j)),
        ],
        out_specs=pl.BlockSpec((tm, tk), lambda i, j, nn: (i, j)),
        scratch_shapes=[pltpu.VMEM((tm, tk), jnp.float32)],
        compiler_params=pltpu.CompilerParams(
            dimension_semantics=("parallel", "parallel", "arbitrary"),
        ),
    )(x, t)

    if (m_pad != m) or (k_pad != k):
        out = out[:m, :k]
    return out


def msrr_reference(inputs, targets, months=1):
    a = jnp.matmul(inputs.T, targets)
    return (1.0 - a) ** 2 / (months * targets.shape[0])


if __name__ == "__main__":
    key = jax.random.PRNGKey(0)
    k1, k2 = jax.random.split(key)

    # Small shapes consistent with the module's 2-D matmul semantics.
    N, M, K = 8, 16, 32
    months = 1

    inputs = jax.random.normal(k1, (N, M), dtype=jnp.float32)
    targets = jax.random.normal(k2, (N, K), dtype=jnp.float32)

    out = msrr(inputs, targets, months=months)
    out = jax.block_until_ready(out)

    ref = msrr_reference(inputs, targets, months=months)
    assert out.shape == (M, K)
    assert jnp.allclose(out, ref, atol=1e-5, rtol=1e-5), "mismatch vs reference"

    # Also exercise the multi-tile / multi-step reduction path.
    N2, M2, K2 = 1040, 384, 272
    inputs2 = jax.random.normal(k1, (N2, M2), dtype=jnp.float32)
    targets2 = jax.random.normal(k2, (N2, K2), dtype=jnp.float32)
    out2 = jax.block_until_ready(msrr(inputs2, targets2, months=3))
    ref2 = msrr_reference(inputs2, targets2, months=3)
    assert out2.shape == (M2, K2)
    assert jnp.allclose(out2, ref2, atol=1e-4, rtol=1e-4), "mismatch (tiled) vs reference"

    print("KERNEL_OK")
</pallas_src>

<mosaic_0001>
module attributes {stable_mosaic.version = 11 : i64} {
  func.func @_msrr_kernel(%arg0: i32, %arg1: i32, %arg2: i32, %arg3: memref<8x128xf32, #tpu.memory_space<vmem>>, %arg4: memref<8x128xf32, #tpu.memory_space<vmem>>, %arg5: memref<128x128xf32, #tpu.memory_space<vmem>>, %arg6: memref<128x128xf32, #tpu.memory_space<vmem>>) attributes {dimension_semantics = [#tpu.dimension_semantics<parallel>, #tpu.dimension_semantics<parallel>, #tpu.dimension_semantics<arbitrary>], iteration_bounds = array<i64: 1, 1, 1>, scalar_prefetch = 0 : i64, scratch_operands = 1 : i64, tpu.core_type = #tpu.core_type<tc>, window_params = [{transform_indices = @transform_0, window_bounds = array<i64: 8, 128>}, {transform_indices = @transform_1, window_bounds = array<i64: 8, 128>}, {transform_indices = @transform_2, window_bounds = array<i64: 128, 128>}]} {
    %c0_i32 = arith.constant 0 : i32
    %0 = arith.cmpi eq, %arg2, %c0_i32 : i32
    %1 = arith.extui %0 : i1 to i32
    %c0_i32_0 = arith.constant 0 : i32
    %2 = arith.cmpi ne, %1, %c0_i32_0 : i32
    scf.if %2 {
      %cst_10 = arith.constant 0.000000e+00 : f32
      %12 = vector.broadcast %cst_10 : f32 to vector<128x128xf32>
      %c0_11 = arith.constant 0 : index
      %c0_12 = arith.constant 0 : index
      %13 = vector.load %arg6[%c0_11, %c0_12] : memref<128x128xf32, #tpu.memory_space<vmem>>, vector<128x128xf32>
      tpu.vector_store %arg6[%c0_11, %c0_12], %12 {strides = array<i32>} : memref<128x128xf32, #tpu.memory_space<vmem>>, vector<128x128xf32>,
    } else {
    }
    %c0 = arith.constant 0 : index
    %c0_1 = arith.constant 0 : index
    %3 = vector.load %arg6[%c0, %c0_1] : memref<128x128xf32, #tpu.memory_space<vmem>>, vector<128x128xf32>
    %c0_2 = arith.constant 0 : index
    %c0_3 = arith.constant 0 : index
    %4 = vector.load %arg3[%c0_2, %c0_3] : memref<8x128xf32, #tpu.memory_space<vmem>>, vector<8x128xf32>
    %c0_4 = arith.constant 0 : index
    %c0_5 = arith.constant 0 : index
    %5 = vector.load %arg4[%c0_4, %c0_5] : memref<8x128xf32, #tpu.memory_space<vmem>>, vector<8x128xf32>
    %cst = arith.constant dense<0.000000e+00> : vector<128x128xf32>
    %6 = tpu.matmul %4, %5, %cst {dimension_numbers = #tpu.dot_dimension_numbers<[0], [0], [1], [1], [0, 1, 1, 1], [], []>} : vector<8x128xf32>, vector<8x128xf32>, vector<128x128xf32> -> vector<128x128xf32>
    %7 = arith.addf %3, %6 : vector<128x128xf32>
    %c0_6 = arith.constant 0 : index
    %c0_7 = arith.constant 0 : index
    %8 = vector.load %arg6[%c0_6, %c0_7] : memref<128x128xf32, #tpu.memory_space<vmem>>, vector<128x128xf32>
    tpu.vector_store %arg6[%c0_6, %c0_7], %7 {strides = array<i32>} : memref<128x128xf32, #tpu.memory_space<vmem>>, vector<128x128xf32>,
    %c0_i32_8 = arith.constant 0 : i32
    %9 = arith.cmpi eq, %arg2, %c0_i32_8 : i32
    %10 = arith.extui %9 : i1 to i32
    %c0_i32_9 = arith.constant 0 : i32
    %11 = arith.cmpi ne, %10, %c0_i32_9 : i32
    scf.if %11 {
      %c0_10 = arith.constant 0 : index
      %c0_11 = arith.constant 0 : index
      %12 = vector.load %arg6[%c0_10, %c0_11] : memref<128x128xf32, #tpu.memory_space<vmem>>, vector<128x128xf32>
      %cst_12 = arith.constant 1.000000e+00 : f32
      %13 = vector.broadcast %cst_12 : f32 to vector<128x128xf32>
      %14 = arith.subf %13, %12 : vector<128x128xf32>
      %15 = arith.mulf %14, %14 : vector<128x128xf32>
      %cst_13 = arith.constant 1.250000e-01 : f32
      %16 = vector.broadcast %cst_13 : f32 to vector<128x128xf32>
      %17 = arith.mulf %15, %16 : vector<128x128xf32>
      %c0_14 = arith.constant 0 : index
      %c0_15 = arith.constant 0 : index
      %18 = vector.load %arg5[%c0_14, %c0_15] : memref<128x128xf32, #tpu.memory_space<vmem>>, vector<128x128xf32>
      tpu.vector_store %arg5[%c0_14, %c0_15], %17 {strides = array<i32>} : memref<128x128xf32, #tpu.memory_space<vmem>>, vector<128x128xf32>,
    } else {
    }
    return
  }
  func.func @transform_0(%arg0: i32, %arg1: i32, %arg2: i32) -> (i32, i32) {
    %c0_i32 = arith.constant 0 : i32
    return %arg2, %arg0 : i32, i32
  }
  func.func @transform_1(%arg0: i32, %arg1: i32, %arg2: i32) -> (i32, i32) {
    %c0_i32 = arith.constant 0 : i32
    return %arg2, %arg1 : i32, i32
  }
  func.func @transform_2(%arg0: i32, %arg1: i32, %arg2: i32) -> (i32, i32) {
    %c0_i32 = arith.constant 0 : i32
    return %arg0, %arg1 : i32, i32
  }
}

</mosaic_0001>

<bundles_post_ra>
// kernel: tpu_custom_call.1
= control target key start
LH: loop header
LB: loop body
LE: loop exit
PB: predicated region body
PF: predicated region fallthrough
CT: control target
= control target key end

     0   :  { %7 = vsyncpa [#allocation4], 0  ;;  %s507_s0 = inlined_call_operand.hbm [shape: f32[8,128], index: 0, kind: input, shape index: {}]   ;;  %s508_s1 = inlined_call_operand.hbm [shape: f32[8,128], index: 1, kind: input, shape index: {}]   ;;  %s509_s2 = inlined_call_operand.hbm [shape: f32[128,128], index: 2, kind: output, shape index: {}]  }
   0x1   :  { %8 = vsyncpa [#allocation7], 0 }
   0x2   :  { %9 = vsyncpa [#allocation5], 0  ;;  %s15_s11 = sshll.u32 %s507_s0, 4  ;;  %s462_s12 = smov [#allocation3]   ;;  %s16_s11 = int_to_ptr.hbm [resolvable:$true] %s15_s11 }
   0x3   :  { %s17_s13 = sshll.u32 %s462_s12, 4  ;;  %s26_s16 = sshll.u32 %s508_s1, 4  ;;  %s18_s13 = int_to_ptr.vmem [resolvable:$true] %s17_s13  ;;  %s27_s16 = int_to_ptr.hbm [resolvable:$true] %s26_s16 }
   0x4   :  { %20 = dma.hbm_to_vmem [thread:$0]  %s16_s11, 128, %s18_s13, [#allocation4]  }
   0x5   :  { %s463_s17 = smov [#allocation6]  }
   0x6   :  { %s28_s18 = sshll.u32 %s463_s17, 4  ;;  %s29_s18 = int_to_ptr.vmem [resolvable:$true] %s28_s18 }
   0x7   :  { %31 = dma.hbm_to_vmem [thread:$0]  %s27_s16, 128, %s29_s18, [#allocation7]  }
   0x8   :  { %456 = dma.done.wait [#allocation4], 128  }
   0x9   :  { %457 = vsyncadd [#allocation4], 4294967168 }
   0xa   :  { %458 = dma.done.wait [#allocation7], 128  }
   0xb   :  { %459 = vsyncadd [#allocation7], 4294967168  ;;  %v76_v0 = vld [vmem:[#allocation3] sm:$0xff]  ;;  %v77_v1 = vld [vmem:[#allocation6] sm:$0xff]  ;;  %vm110_vm0 = vcmask 64512   ;;  %s464_s0 = smov [#allocation8]  }
   0xc   :  { %78 = vxpose.xlu0.b32.start.end [1/1] (short) %v76_v0, 128  ;;  %174 = vmatpush.msra.mxu0 %v77_v1  ;;  %s343_s1 = sshll.u32 %s464_s0, 4  ;;  %s345_s21 = sshll.u32 %s509_s2, 4  ;;  %s344_s1 = int_to_ptr.vmem [resolvable:$true] %s343_s1  ;;  %s346_s21 = int_to_ptr.hbm [resolvable:$true] %s345_s21 }
   0xd   :  { %375 = vmatpush.msra.mxu1 %v77_v1  ;;  %376 = vmatpush.msra.mxu2 %v77_v1  ;;  %s465_s22 = smov 128   ;;  %s466_s23 = smov 8  }
   0xe   :  { %377 = vmatpush.msra.mxu3 %v77_v1 }
  0xb0   :  { %v94_v2 = vpop.trf.xlu0 }
  0xb1   :  { %359 = vmatmul.msk.f32.vlgmr.msra.gmra.mxu0 %vm110_vm0, %v94_v2 }
  0xb8   :  { %v95_v3 = vpop.trf.xlu0 }
  0xb9   :  { %360 = vmatmul.msk.f32.gmra.mxu0 %vm110_vm0, %v95_v3 }
  0xc0   :  { %v96_v4 = vpop.trf.xlu0 }
  0xc1   :  { %361 = vmatmul.msk.f32.gmra.mxu0 %vm110_vm0, %v96_v4 }
  0xc8   :  { %v97_v5 = vpop.trf.xlu0 }
  0xc9   :  { %362 = vmatmul.msk.f32.gmra.mxu0 %vm110_vm0, %v97_v5 }
  0xd0   :  { %v98_v6 = vpop.trf.xlu0 }
  0xd1   :  { %363 = vmatmul.msk.f32.vlgmr.msra.gmra.mxu1 %vm110_vm0, %v98_v6 }
  0xd8   :  { %v99_v7 = vpop.trf.xlu0 }
  0xd9   :  { %364 = vmatmul.msk.f32.gmra.mxu1 %vm110_vm0, %v99_v7 }
  0xe0   :  { %v100_v8 = vpop.trf.xlu0 }
  0xe1   :  { %365 = vmatmul.msk.f32.gmra.mxu1 %vm110_vm0, %v100_v8 }
  0xe8   :  { %v101_v9 = vpop.trf.xlu0 }
  0xe9   :  { %366 = vmatmul.msk.f32.gmra.mxu1 %vm110_vm0, %v101_v9 }
  0xf0   :  { %v102_v10 = vpop.trf.xlu0 }
  0xf1   :  { %367 = vmatmul.msk.f32.vlgmr.msra.gmra.mxu2 %vm110_vm0, %v102_v10 }
  0xf8   :  { %v103_v11 = vpop.trf.xlu0 }
  0xf9   :  { %368 = vmatmul.msk.f32.gmra.mxu2 %vm110_vm0, %v103_v11 }
 0x100   :  { %v104_v12 = vpop.trf.xlu0 }
 0x101   :  { %369 = vmatmul.msk.f32.gmra.mxu2 %vm110_vm0, %v104_v12 }
 0x108   :  { %v105_v13 = vpop.trf.xlu0 }
 0x109   :  { %370 = vmatmul.msk.f32.gmra.mxu2 %vm110_vm0, %v105_v13 }
 0x110   :  { %v106_v14 = vpop.trf.xlu0 }
 0x111   :  { %371 = vmatmul.msk.f32.vlgmr.msra.gmra.mxu3 %vm110_vm0, %v106_v14 }
 0x118   :  { %v107_v15 = vpop.trf.xlu0 }
 0x119   :  { %372 = vmatmul.msk.f32.gmra.mxu3 %vm110_vm0, %v107_v15 }
 0x120   :  { %v108_v16 = vpop.trf.xlu0 }
 0x121   :  { %373 = vmatmul.msk.f32.gmra.mxu3 %vm110_vm0, %v108_v16 }
 0x128   :  { %v109_v17 = vpop.trf.xlu0 }
 0x129   :  { %374 = vmatmul.msk.f32.gmra.mxu3 %vm110_vm0, %v109_v17 }
 0x12e   :  { %v176_v18 = vpop.f32.mrf.mxu0 }
 0x12f   :  { %v275_v19 = vsub.f32 1.0, %v176_v18 }
 0x131   :  { %v291_v20 = vmul.f32 %v275_v19, %v275_v19 }
 0x133   :  { %v307_v21 = vmul.f32 0.125, %v291_v20 }
 0x135   :  { %323 = vst [vmem:[#allocation8] sm:$0xff] %v307_v21 }
 0x136   :  { %v179_v22 = vpop.f32.mrf.mxu0 }
 0x137   :  { %v276_v23 = vsub.f32 1.0, %v179_v22 }
 0x139   :  { %v292_v24 = vmul.f32 %v276_v23, %v276_v23 }
 0x13b   :  { %v308_v25 = vmul.f32 0.125, %v292_v24 }
 0x13d   :  { %324 = vst [vmem:[#allocation8 + $0x8] sm:$0xff] %v308_v25 }
 0x13e   :  { %v182_v26 = vpop.f32.mrf.mxu0 }
 0x13f   :  { %v277_v27 = vsub.f32 1.0, %v182_v26 }
 0x141   :  { %v293_v28 = vmul.f32 %v277_v27, %v277_v27 }
 0x143   :  { %v309_v29 = vmul.f32 0.125, %v293_v28 }
 0x145   :  { %325 = vst [vmem:[#allocation8 + $0x10] sm:$0xff] %v309_v29 }
 0x146   :  { %v185_v30 = vpop.f32.mrf.mxu0 }
 0x147   :  { %v278_v31 = vsub.f32 1.0, %v185_v30 }
 0x149   :  { %v294_v32 = vmul.f32 %v278_v31, %v278_v31 }
 0x14b   :  { %v310_v33 = vmul.f32 0.125, %v294_v32 }
 0x14d   :  { %326 = vst [vmem:[#allocation8 + $0x18] sm:$0xff] %v310_v33 }
 0x14e   :  { %v188_v34 = vpop.f32.mrf.mxu1 }
 0x14f   :  { %v279_v35 = vsub.f32 1.0, %v188_v34 }
 0x151   :  { %v295_v36 = vmul.f32 %v279_v35, %v279_v35 }
 0x153   :  { %v311_v37 = vmul.f32 0.125, %v295_v36 }
 0x155   :  { %327 = vst [vmem:[#allocation8 + $0x20] sm:$0xff] %v311_v37 }
 0x156   :  { %v191_v38 = vpop.f32.mrf.mxu1 }
 0x157   :  { %v280_v39 = vsub.f32 1.0, %v191_v38 }
 0x159   :  { %v296_v40 = vmul.f32 %v280_v39, %v280_v39 }
 0x15b   :  { %v312_v41 = vmul.f32 0.125, %v296_v40 }
 0x15d   :  { %328 = vst [vmem:[#allocation8 + $0x28] sm:$0xff] %v312_v41 }
 0x15e   :  { %v194_v42 = vpop.f32.mrf.mxu1 }
 0x15f   :  { %v281_v43 = vsub.f32 1.0, %v194_v42 }
 0x161   :  { %v297_v44 = vmul.f32 %v281_v43, %v281_v43 }
 0x163   :  { %v313_v45 = vmul.f32 0.125, %v297_v44 }
 0x165   :  { %329 = vst [vmem:[#allocation8 + $0x30] sm:$0xff] %v313_v45 }
 0x166   :  { %v197_v46 = vpop.f32.mrf.mxu1 }
 0x167   :  { %v282_v47 = vsub.f32 1.0, %v197_v46 }
 0x169   :  { %v298_v48 = vmul.f32 %v282_v47, %v282_v47 }
 0x16b   :  { %v314_v49 = vmul.f32 0.125, %v298_v48 }
 0x16d   :  { %330 = vst [vmem:[#allocation8 + $0x38] sm:$0xff] %v314_v49 }
 0x174   :  { %v200_v50 = vpop.f32.mrf.mxu2 }
 0x175   :  { %v283_v51 = vsub.f32 1.0, %v200_v50 }
 0x177   :  { %v299_v52 = vmul.f32 %v283_v51, %v283_v51 }
 0x179   :  { %v315_v53 = vmul.f32 0.125, %v299_v52 }
 0x17b   :  { %331 = vst [vmem:[#allocation8 + $0x40] sm:$0xff] %v315_v53 }
 0x17c   :  { %v203_v54 = vpop.f32.mrf.mxu2 }
 0x17d   :  { %v284_v55 = vsub.f32 1.0, %v203_v54 }
 0x17f   :  { %v300_v56 = vmul.f32 %v284_v55, %v284_v55 }
 0x181   :  { %v316_v57 = vmul.f32 0.125, %v300_v56 }
 0x183   :  { %332 = vst [vmem:[#allocation8 + $0x48] sm:$0xff] %v316_v57 }
 0x184   :  { %v206_v58 = vpop.f32.mrf.mxu2 }
 0x185   :  { %v285_v59 = vsub.f32 1.0, %v206_v58 }
 0x187   :  { %v301_v60 = vmul.f32 %v285_v59, %v285_v59 }
 0x189   :  { %v317_v61 = vmul.f32 0.125, %v301_v60 }
 0x18b   :  { %333 = vst [vmem:[#allocation8 + $0x50] sm:$0xff] %v317_v61 }
 0x18c   :  { %v209_v62 = vpop.f32.mrf.mxu2 }
 0x18d   :  { %v286_v63 = vsub.f32 1.0, %v209_v62 }
 0x18f   :  { %v302_v0 = vmul.f32 %v286_v63, %v286_v63 }
 0x191   :  { %v318_v1 = vmul.f32 0.125, %v302_v0 }
 0x193   :  { %334 = vst [vmem:[#allocation8 + $0x58] sm:$0xff] %v318_v1 }
 0x194   :  { %v212_v2 = vpop.f32.mrf.mxu3 }
 0x195   :  { %v287_v3 = vsub.f32 1.0, %v212_v2 }
 0x197   :  { %v303_v4 = vmul.f32 %v287_v3, %v287_v3 }
 0x199   :  { %v319_v5 = vmul.f32 0.125, %v303_v4 }
 0x19b   :  { %335 = vst [vmem:[#allocation8 + $0x60] sm:$0xff] %v319_v5 }
 0x19c   :  { %v215_v6 = vpop.f32.mrf.mxu3 }
 0x19d   :  { %v288_v7 = vsub.f32 1.0, %v215_v6 }
 0x19f   :  { %v304_v8 = vmul.f32 %v288_v7, %v288_v7 }
 0x1a1   :  { %v320_v9 = vmul.f32 0.125, %v304_v8 }
 0x1a3   :  { %336 = vst [vmem:[#allocation8 + $0x68] sm:$0xff] %v320_v9 }
 0x1a4   :  { %v218_v10 = vpop.f32.mrf.mxu3 }
 0x1a5   :  { %v289_v11 = vsub.f32 1.0, %v218_v10 }
 0x1a7   :  { %v305_v12 = vmul.f32 %v289_v11, %v289_v11 }
 0x1a9   :  { %v321_v13 = vmul.f32 0.125, %v305_v12 }
 0x1ab   :  { %337 = vst [vmem:[#allocation8 + $0x70] sm:$0xff] %v321_v13 }
 0x1ac   :  { %v221_v14 = vpop.f32.mrf.mxu3 }
 0x1ad   :  { %v290_v15 = vsub.f32 1.0, %v221_v14 }
 0x1af   :  { %v306_v16 = vmul.f32 %v290_v15, %v290_v15 }
 0x1b1   :  { %v322_v17 = vmul.f32 0.125, %v306_v16 }
 0x1b3   :  { %338 = vst [vmem:[#allocation8 + $0x78] sm:$0xff] %v322_v17 }
 0x1b4   :  { %351 = dma.vmem_to_hbm [thread:$0]  %s344_s1, 2048, %s346_s21, [#allocation5], %s465_s22, %s465_s22, %s466_s23  }
 0x1b5   :  { %460 = dma.done.wait [#allocation5], 2048  }
 0x1b6   :  { %461 = vsyncadd [#allocation5], 4294965248 }
 0x1b7   :  { %356 = vsyncpa [#allocation4], 1 }
 0x1b8   :  { %357 = vsyncpa [#allocation7], 1 }
 0x1b9   :  { %358 = vsyncpa [#allocation5], 1 }

</bundles_post_ra>
